<compile_context>
chip_gen: v6e
topology: v6e:2x2x1
jax: 0.10.0
libtpu: 0.0.40
codegen_flags: <defaults>
</compile_context>

<pallas_src>
import functools

import jax
import jax.numpy as jnp
from jax import lax
from jax.experimental import pallas as pl
from jax.experimental.pallas import tpu as pltpu


def basic_block_kernel(x_ref, w1_ref, w2_ref, b_ref, out_ref, *, H):
    """BasicBlock forward for NB images packed into the M (row) dimension.

    x_ref  : (M, W*Cin)   M = NB*H rows of NB images, channels packed in lanes
    w1_ref : (3, W*Cin, W*Cout)  conv1 banded weights (BN1 scale pre-folded)
    w2_ref : (3, W*Cout, W*Cout) conv2 banded weights (BN2 scale pre-folded)
    b_ref  : (2, W*Cout)  rows = [bn1 bias, bn2 bias] (lane-tiled)
    out_ref: (M, W*Cout)
    """
    M, _ = x_ref.shape
    WCo = out_ref.shape[-1]
    f32 = jnp.float32

    x = x_ref[...]
    b = b_ref[...]

    # Image-local row index for every output row. The masks replace the
    # H-direction zero padding (the circular roll wraps rows across image /
    # block boundaries, so those contributions must be dropped).
    h = lax.broadcasted_iota(jnp.int32, (M, WCo), 0) % H
    keep_up = h != 0          # row h may receive p0[h-1] only if h > 0
    keep_dn = h != (H - 1)    # row h may receive p2[h+1] only if h < H-1

    def conv3x3_banded(a, w_ref):
        # Three aligned lane-dense MXU matmuls (one per kh tap).  The H shift
        # is applied to the *results* via sublane roll (XLU) + boundary mask,
        # so no misaligned slice ever feeds the MXU or a store.
        p0 = jnp.dot(a, w_ref[0], preferred_element_type=f32)
        p1 = jnp.dot(a, w_ref[1], preferred_element_type=f32)
        p2 = jnp.dot(a, w_ref[2], preferred_element_type=f32)
        up = pltpu.roll(p0, 1, axis=0)        # up[h] = p0[h-1]
        dn = pltpu.roll(p2, M - 1, axis=0)    # dn[h] = p2[h+1]
        return p1 + jnp.where(keep_up, up, 0.0) + jnp.where(keep_dn, dn, 0.0)

    # conv1 (BN1 scale folded into the weight) + BN1 bias + ReLU
    out1 = jnp.maximum(conv3x3_banded(x, w1_ref) + b[0:1, :], 0.0)
    # conv2 (BN2 scale folded) + BN2 bias + residual (aligned x tile) + ReLU
    out2 = conv3x3_banded(out1, w2_ref) + b[1:2, :] + x
    out_ref[...] = jnp.maximum(out2, 0.0).astype(out_ref.dtype)


def fold_bn(gamma, beta, mean, var, eps=1e-5):
    scale = gamma / jnp.sqrt(var + eps)
    bias = beta - mean * scale
    return scale, bias


def band_weights(w_hwio, W):
    """Fold the 3 kw taps and the W-direction zero padding of a 3x3 conv into
    3 block-banded (W*Cin, W*Cout) matrices (one per kh tap).

    band[kh][wi*Cin + ci, wo*Cout + co] = w[kh, kw, ci, co] with wi = wo+kw-1;
    entries with wi outside [0, W) are simply absent (== zero padding).
    """
    _, _, Cin, Cout = w_hwio.shape
    wi = jnp.arange(W)[:, None]
    wo = jnp.arange(W)[None, :]
    out = jnp.zeros((3, W, Cin, W, Cout), w_hwio.dtype)
    for kw in range(3):
        mask = (wi == wo + kw - 1).astype(w_hwio.dtype)               # (W, W)
        out = out + (mask[None, :, None, :, None]
                     * w_hwio[:, kw][:, None, :, None, :])
    return out.reshape(3, W * Cin, W * Cout)


def choose_images_per_step(N, H, target_rows=256):
    """Images per grid step: big enough M for MXU occupancy, but keep >= 2
    grid steps (the parallel axis feeds v7x's two TensorCores) when N allows."""
    nb = min(N, max(1, target_rows // H))
    while N % nb:
        nb -= 1
    while nb > 1 and N // nb < 2:
        nb -= 1
        while N % nb:
            nb -= 1
    return nb


def basic_block_pallas(x_nchw, params, *, images_per_step=None):
    """Runs the Pallas BasicBlock kernel. Input/output are NCHW like PyTorch."""
    N, Cin, H, W = x_nchw.shape
    Cout = params["w1"].shape[-1]
    assert Cin == Cout, "downsample=None requires inplanes == planes"
    WCi, WCo = W * Cin, W * Cout
    assert WCi % 128 == 0, "lane-dense layout needs W*C to be a lane multiple"
    assert H % 8 == 0, "sublane-aligned rows"

    # Fold BN scales (per-output-channel, hence linear in the conv weight)
    # into the banded weights; only the biases go to the kernel.
    s1, b1 = fold_bn(params["g1"], params["be1"], params["m1"], params["v1"])
    s2, b2 = fold_bn(params["g2"], params["be2"], params["m2"], params["v2"])
    wb1 = band_weights(params["w1"] * s1[None, None, None, :], W)  # (3,WCi,WCo)
    wb2 = band_weights(params["w2"] * s2[None, None, None, :], W)  # (3,WCo,WCo)
    bias = jnp.stack([jnp.tile(b1, W), jnp.tile(b2, W)], axis=0)   # (2, WCo)

    # NCHW -> NHWC -> lane-dense rows (N*H, W*C); contiguous reshape is free.
    x2d = jnp.transpose(x_nchw, (0, 2, 3, 1)).reshape(N * H, WCi)

    nb = images_per_step or choose_images_per_step(N, H)
    M = nb * H
    steps = N // nb

    kernel = functools.partial(basic_block_kernel, H=H)
    out2d = pl.pallas_call(
        kernel,
        out_shape=jax.ShapeDtypeStruct((N * H, WCo), jnp.float32),
        grid_spec=pltpu.PrefetchScalarGridSpec(
            num_scalar_prefetch=0,
            grid=(steps,),
            in_specs=[
                pl.BlockSpec((M, WCi), lambda i: (i, 0)),          # NB images
                pl.BlockSpec((3, WCi, WCo), lambda i: (0, 0, 0)),  # conv1 band
                pl.BlockSpec((3, WCo, WCo), lambda i: (0, 0, 0)),  # conv2 band
                pl.BlockSpec((2, WCo), lambda i: (0, 0)),          # BN biases
            ],
            out_specs=pl.BlockSpec((M, WCo), lambda i: (i, 0)),
        ),
        compiler_params=pltpu.CompilerParams(
            dimension_semantics=("parallel",)),
    )(x2d, wb1, wb2, bias)

    return jnp.transpose(out2d.reshape(N, H, W, Cout), (0, 3, 1, 2))  # -> NCHW


def basic_block_reference(x_nchw, params):
    """Pure-JAX reference (lax conv) for correctness checking."""
    x = jnp.transpose(x_nchw, (0, 2, 3, 1))
    dn = ("NHWC", "HWIO", "NHWC")

    def conv(inp, w):
        return lax.conv_general_dilated(inp, w, window_strides=(1, 1),
                                        padding=((1, 1), (1, 1)),
                                        dimension_numbers=dn,
                                        precision=lax.Precision.HIGHEST)

    def bn(inp, g, be, m, v, eps=1e-5):
        return (inp - m) / jnp.sqrt(v + eps) * g + be

    out = conv(x, params["w1"])
    out = jnp.maximum(bn(out, params["g1"], params["be1"],
                         params["m1"], params["v1"]), 0.0)
    out = conv(out, params["w2"])
    out = bn(out, params["g2"], params["be2"], params["m2"], params["v2"])
    out = jnp.maximum(out + x, 0.0)
    return jnp.transpose(out, (0, 3, 1, 2))


def make_params(key, inplanes, planes):
    ks = jax.random.split(key, 8)
    return {
        # conv weights stored HWIO: (3, 3, Cin, Cout)
        "w1": jax.random.normal(ks[0], (3, 3, inplanes, planes), jnp.float32) * 0.1,
        "w2": jax.random.normal(ks[1], (3, 3, planes, planes), jnp.float32) * 0.1,
        # bn1
        "g1": jax.random.normal(ks[2], (planes,), jnp.float32) * 0.1 + 1.0,
        "be1": jax.random.normal(ks[3], (planes,), jnp.float32) * 0.1,
        "m1": jax.random.normal(ks[4], (planes,), jnp.float32) * 0.1,
        "v1": jax.random.uniform(ks[5], (planes,), jnp.float32) + 0.5,
        # bn2
        "g2": jax.random.normal(ks[6], (planes,), jnp.float32) * 0.1 + 1.0,
        "be2": jax.random.normal(ks[7], (planes,), jnp.float32) * 0.1,
        "m2": jnp.zeros((planes,), jnp.float32),
        "v2": jnp.ones((planes,), jnp.float32),
    }


if __name__ == "__main__":
    key = jax.random.PRNGKey(0)
    kx, kp = jax.random.split(key)

    # BasicBlock(inplanes=8, planes=8, stride=1, downsample=None, dilation=1)
    # N=8 so the wrapper batches 4 images per grid step (M=64 rows) while
    # keeping 2 parallel grid steps; W*C = 128 -> exactly one full lane row.
    N, C, H, W = 8, 8, 16, 16
    x = jax.random.normal(kx, (N, C, H, W), jnp.float32)   # NCHW like PyTorch
    params = make_params(kp, C, C)

    out = basic_block_pallas(x, params)
    out = jax.block_until_ready(out)

    ref = basic_block_reference(x, params)
    assert out.shape == (N, C, H, W)
    assert jnp.allclose(out, ref, atol=1e-4, rtol=1e-4), "mismatch vs JAX reference"

    print("KERNEL_OK")
</pallas_src>

<mosaic_0001>
module attributes {stable_mosaic.version = 11 : i64} {
  func.func @basic_block_kernel(%arg0: i32, %arg1: memref<64x128xf32, #tpu.memory_space<vmem>>, %arg2: memref<3x128x128xf32, #tpu.memory_space<vmem>>, %arg3: memref<3x128x128xf32, #tpu.memory_space<vmem>>, %arg4: memref<2x128xf32, #tpu.memory_space<vmem>>, %arg5: memref<64x128xf32, #tpu.memory_space<vmem>>) attributes {dimension_semantics = [#tpu.dimension_semantics<parallel>], iteration_bounds = array<i64: 2>, scalar_prefetch = 0 : i64, scratch_operands = 0 : i64, tpu.core_type = #tpu.core_type<tc>, window_params = [{transform_indices = @transform_0, window_bounds = array<i64: 64, 128>}, {pipeline_mode = #tpu.pipeline_mode<synchronous>, transform_indices = @transform_1, window_bounds = array<i64: 3, 128, 128>}, {pipeline_mode = #tpu.pipeline_mode<synchronous>, transform_indices = @transform_2, window_bounds = array<i64: 3, 128, 128>}, {pipeline_mode = #tpu.pipeline_mode<synchronous>, transform_indices = @transform_3, window_bounds = array<i64: 2, 128>}, {transform_indices = @transform_4, window_bounds = array<i64: 64, 128>}]} {
    %c0 = arith.constant 0 : index
    %c0_0 = arith.constant 0 : index
    %0 = vector.load %arg1[%c0, %c0_0] : memref<64x128xf32, #tpu.memory_space<vmem>>, vector<64x128xf32>
    %c0_1 = arith.constant 0 : index
    %c0_2 = arith.constant 0 : index
    %1 = vector.load %arg4[%c0_1, %c0_2] : memref<2x128xf32, #tpu.memory_space<vmem>>, vector<2x128xf32>
    %2 = tpu.iota {dimensions = array<i32: 0>} : vector<64x128xi32>
    %c16_i32 = arith.constant 16 : i32
    %c0_i32 = arith.constant 0 : i32
    %3 = arith.cmpi eq, %c16_i32, %c0_i32 : i32
    %c1_i32 = arith.constant 1 : i32
    %4 = arith.select %3, %c1_i32, %c16_i32 : i32
    %5 = vector.broadcast %4 : i32 to vector<64x128xi32>
    %6 = arith.remsi %2, %5 : vector<64x128xi32>
    %c0_i32_3 = arith.constant 0 : i32
    %7 = vector.broadcast %c0_i32_3 : i32 to vector<64x128xi32>
    %8 = arith.cmpi ne, %6, %7 : vector<64x128xi32>
    %c0_i32_4 = arith.constant 0 : i32
    %9 = vector.broadcast %c0_i32_4 : i32 to vector<64x128xi32>
    %10 = arith.cmpi slt, %6, %9 : vector<64x128xi32>
    %c0_i32_5 = arith.constant 0 : i32
    %11 = arith.cmpi slt, %4, %c0_i32_5 : i32
    %12 = vector.broadcast %11 : i1 to vector<64x128xi1>
    %13 = vector.broadcast %12 : vector<64x128xi1> to vector<64x128xi1>
    %14 = arith.xori %10, %13 : vector<64x128xi1>
    %15 = arith.andi %14, %8 : vector<64x128xi1>
    %16 = vector.broadcast %4 : i32 to vector<64x128xi32>
    %17 = arith.addi %6, %16 : vector<64x128xi32>
    %18 = arith.select %15, %17, %6 : vector<64x128xi1>, vector<64x128xi32>
    %c0_i32_6 = arith.constant 0 : i32
    %19 = vector.broadcast %c0_i32_6 : i32 to vector<64x128xi32>
    %20 = arith.cmpi ne, %18, %19 : vector<64x128xi32>
    %c15_i32 = arith.constant 15 : i32
    %21 = vector.broadcast %c15_i32 : i32 to vector<64x128xi32>
    %22 = arith.cmpi ne, %18, %21 : vector<64x128xi32>
    %c0_7 = arith.constant 0 : index
    %c0_8 = arith.constant 0 : index
    %c0_9 = arith.constant 0 : index
    %23 = vector.load %arg2[%c0_7, %c0_8, %c0_9] : memref<3x128x128xf32, #tpu.memory_space<vmem>>, vector<1x128x128xf32>
    %24 = vector.shape_cast %23 : vector<1x128x128xf32> to vector<128x128xf32>
    %cst = arith.constant dense<0.000000e+00> : vector<64x128xf32>
    %25 = tpu.matmul %0, %24, %cst {dimension_numbers = #tpu.dot_dimension_numbers<[1], [0], [0], [1], [0, 0, 1, 1], [], []>} : vector<64x128xf32>, vector<128x128xf32>, vector<64x128xf32> -> vector<64x128xf32>
    %c1 = arith.constant 1 : index
    %c0_10 = arith.constant 0 : index
    %c0_11 = arith.constant 0 : index
    %26 = vector.load %arg2[%c1, %c0_10, %c0_11] : memref<3x128x128xf32, #tpu.memory_space<vmem>>, vector<1x128x128xf32>
    %27 = vector.shape_cast %26 : vector<1x128x128xf32> to vector<128x128xf32>
    %cst_12 = arith.constant dense<0.000000e+00> : vector<64x128xf32>
    %28 = tpu.matmul %0, %27, %cst_12 {dimension_numbers = #tpu.dot_dimension_numbers<[1], [0], [0], [1], [0, 0, 1, 1], [], []>} : vector<64x128xf32>, vector<128x128xf32>, vector<64x128xf32> -> vector<64x128xf32>
    %c2 = arith.constant 2 : index
    %c0_13 = arith.constant 0 : index
    %c0_14 = arith.constant 0 : index
    %29 = vector.load %arg2[%c2, %c0_13, %c0_14] : memref<3x128x128xf32, #tpu.memory_space<vmem>>, vector<1x128x128xf32>
    %30 = vector.shape_cast %29 : vector<1x128x128xf32> to vector<128x128xf32>
    %cst_15 = arith.constant dense<0.000000e+00> : vector<64x128xf32>
    %31 = tpu.matmul %0, %30, %cst_15 {dimension_numbers = #tpu.dot_dimension_numbers<[1], [0], [0], [1], [0, 0, 1, 1], [], []>} : vector<64x128xf32>, vector<128x128xf32>, vector<64x128xf32> -> vector<64x128xf32>
    %c1_i32_16 = arith.constant 1 : i32
    %32 = tpu.dynamic_rotate %25 by %c1_i32_16 dim 0 : vector<64x128xf32>, i32 -> vector<64x128xf32>
    %c63_i32 = arith.constant 63 : i32
    %33 = tpu.dynamic_rotate %31 by %c63_i32 dim 0 : vector<64x128xf32>, i32 -> vector<64x128xf32>
    %cst_17 = arith.constant 0.000000e+00 : f32
    %34 = vector.broadcast %cst_17 : f32 to vector<64x128xf32>
    %35 = arith.select %20, %32, %34 : vector<64x128xi1>, vector<64x128xf32>
    %36 = arith.addf %28, %35 : vector<64x128xf32>
    %cst_18 = arith.constant 0.000000e+00 : f32
    %37 = vector.broadcast %cst_18 : f32 to vector<64x128xf32>
    %38 = arith.select %22, %33, %37 : vector<64x128xi1>, vector<64x128xf32>
    %39 = arith.addf %36, %38 : vector<64x128xf32>
    %40 = vector.extract_strided_slice %1 {offsets = [0, 0], sizes = [1, 128], strides = [1, 1]} : vector<2x128xf32> to vector<1x128xf32>
    %41 = vector.broadcast %40 : vector<1x128xf32> to vector<64x128xf32>
    %42 = arith.addf %39, %41 : vector<64x128xf32>
    %cst_19 = arith.constant 0.000000e+00 : f32
    %43 = vector.broadcast %cst_19 : f32 to vector<64x128xf32>
    %44 = arith.maximumf %42, %43 : vector<64x128xf32>
    %c0_20 = arith.constant 0 : index
    %c0_21 = arith.constant 0 : index
    %c0_22 = arith.constant 0 : index
    %45 = vector.load %arg3[%c0_20, %c0_21, %c0_22] : memref<3x128x128xf32, #tpu.memory_space<vmem>>, vector<1x128x128xf32>
    %46 = vector.shape_cast %45 : vector<1x128x128xf32> to vector<128x128xf32>
    %cst_23 = arith.constant dense<0.000000e+00> : vector<64x128xf32>
    %47 = tpu.matmul %44, %46, %cst_23 {dimension_numbers = #tpu.dot_dimension_numbers<[1], [0], [0], [1], [0, 0, 1, 1], [], []>} : vector<64x128xf32>, vector<128x128xf32>, vector<64x128xf32> -> vector<64x128xf32>
    %c1_24 = arith.constant 1 : index
    %c0_25 = arith.constant 0 : index
    %c0_26 = arith.constant 0 : index
    %48 = vector.load %arg3[%c1_24, %c0_25, %c0_26] : memref<3x128x128xf32, #tpu.memory_space<vmem>>, vector<1x128x128xf32>
    %49 = vector.shape_cast %48 : vector<1x128x128xf32> to vector<128x128xf32>
    %cst_27 = arith.constant dense<0.000000e+00> : vector<64x128xf32>
    %50 = tpu.matmul %44, %49, %cst_27 {dimension_numbers = #tpu.dot_dimension_numbers<[1], [0], [0], [1], [0, 0, 1, 1], [], []>} : vector<64x128xf32>, vector<128x128xf32>, vector<64x128xf32> -> vector<64x128xf32>
    %c2_28 = arith.constant 2 : index
    %c0_29 = arith.constant 0 : index
    %c0_30 = arith.constant 0 : index
    %51 = vector.load %arg3[%c2_28, %c0_29, %c0_30] : memref<3x128x128xf32, #tpu.memory_space<vmem>>, vector<1x128x128xf32>
    %52 = vector.shape_cast %51 : vector<1x128x128xf32> to vector<128x128xf32>
    %cst_31 = arith.constant dense<0.000000e+00> : vector<64x128xf32>
    %53 = tpu.matmul %44, %52, %cst_31 {dimension_numbers = #tpu.dot_dimension_numbers<[1], [0], [0], [1], [0, 0, 1, 1], [], []>} : vector<64x128xf32>, vector<128x128xf32>, vector<64x128xf32> -> vector<64x128xf32>
    %c1_i32_32 = arith.constant 1 : i32
    %54 = tpu.dynamic_rotate %47 by %c1_i32_32 dim 0 : vector<64x128xf32>, i32 -> vector<64x128xf32>
    %c63_i32_33 = arith.constant 63 : i32
    %55 = tpu.dynamic_rotate %53 by %c63_i32_33 dim 0 : vector<64x128xf32>, i32 -> vector<64x128xf32>
    %cst_34 = arith.constant 0.000000e+00 : f32
    %56 = vector.broadcast %cst_34 : f32 to vector<64x128xf32>
    %57 = arith.select %20, %54, %56 : vector<64x128xi1>, vector<64x128xf32>
    %58 = arith.addf %50, %57 : vector<64x128xf32>
    %cst_35 = arith.constant 0.000000e+00 : f32
    %59 = vector.broadcast %cst_35 : f32 to vector<64x128xf32>
    %60 = arith.select %22, %55, %59 : vector<64x128xi1>, vector<64x128xf32>
    %61 = arith.addf %58, %60 : vector<64x128xf32>
    %62 = vector.extract_strided_slice %1 {offsets = [1, 0], sizes = [1, 128], strides = [1, 1]} : vector<2x128xf32> to vector<1x128xf32>
    %63 = vector.broadcast %62 : vector<1x128xf32> to vector<64x128xf32>
    %64 = arith.addf %61, %63 : vector<64x128xf32>
    %65 = arith.addf %64, %0 : vector<64x128xf32>
    %cst_36 = arith.constant 0.000000e+00 : f32
    %66 = vector.broadcast %cst_36 : f32 to vector<64x128xf32>
    %67 = arith.maximumf %65, %66 : vector<64x128xf32>
    %c0_37 = arith.constant 0 : index
    %c0_38 = arith.constant 0 : index
    %68 = vector.load %arg5[%c0_37, %c0_38] : memref<64x128xf32, #tpu.memory_space<vmem>>, vector<64x128xf32>
    tpu.vector_store %arg5[%c0_37, %c0_38], %67 {strides = array<i32>} : memref<64x128xf32, #tpu.memory_space<vmem>>, vector<64x128xf32>,
    return
  }
  func.func @transform_0(%arg0: i32) -> (i32, i32) {
    %c0_i32 = arith.constant 0 : i32
    %c0_i32_0 = arith.constant 0 : i32
    return %arg0, %c0_i32 : i32, i32
  }
  func.func @transform_1(%arg0: i32) -> (i32, i32, i32) {
    %c0_i32 = arith.constant 0 : i32
    %c0_i32_0 = arith.constant 0 : i32
    %c0_i32_1 = arith.constant 0 : i32
    %c0_i32_2 = arith.constant 0 : i32
    return %c0_i32, %c0_i32_0, %c0_i32_1 : i32, i32, i32
  }
  func.func @transform_2(%arg0: i32) -> (i32, i32, i32) {
    %c0_i32 = arith.constant 0 : i32
    %c0_i32_0 = arith.constant 0 : i32
    %c0_i32_1 = arith.constant 0 : i32
    %c0_i32_2 = arith.constant 0 : i32
    return %c0_i32, %c0_i32_0, %c0_i32_1 : i32, i32, i32
  }
  func.func @transform_3(%arg0: i32) -> (i32, i32) {
    %c0_i32 = arith.constant 0 : i32
    %c0_i32_0 = arith.constant 0 : i32
    %c0_i32_1 = arith.constant 0 : i32
    return %c0_i32, %c0_i32_0 : i32, i32
  }
  func.func @transform_4(%arg0: i32) -> (i32, i32) {
    %c0_i32 = arith.constant 0 : i32
    %c0_i32_0 = arith.constant 0 : i32
    return %arg0, %c0_i32 : i32, i32
  }
}

</mosaic_0001>

<bundles_post_ra>
// kernel: tpu_custom_call.1
= control target key start
LH: loop header
LB: loop body
LE: loop exit
PB: predicated region body
PF: predicated region fallthrough
CT: control target
= control target key end

     0   :  { %9 = vsyncpa [#allocation3], 0  ;;  %s2615_s0 = inlined_call_operand.hbm [shape: f32[128,128], index: 0, kind: input, shape index: {}]   ;;  %s2616_s1 = inlined_call_operand.hbm [shape: f32[3,128,128], index: 1, kind: input, shape index: {}]   ;;  %s2617_s2 = inlined_call_operand.hbm [shape: f32[3,128,128], index: 2, kind: input, shape index: {}]   ;;  %s2618_s3 = inlined_call_operand.vmem [shape: f32[2,128], index: 3, kind: input, shape index: {}]   ;;  %s2619_s4 = inlined_call_operand.hbm [shape: f32[128,128], index: 4, kind: output, shape index: {}]  }
   0x1   :  { %11 = vsyncpa [#allocation3 + $0x1], 0 }
   0x2   :  { %12 = vsyncpa [#allocation6], 0 }
   0x3   :  { %13 = vsyncpa [#allocation4], 0 }
   0x4   :  { %15 = vsyncpa [#allocation4 + $0x1], 0  ;;  %s2065_s15 = smov 0   ;;  %s2067_s16 = smov 0  }
   0x5   :  { %s2069_s17 = smov 0   ;;  %s2071_s18 = smov 0  }
   0x6 LB: > { %s2086_s19 = sadd.s32 4294967295, %s2030_s18   ;;  %s1383_s20 = sadd.s32 4294967294, %s2030_s18   ;;  %s2030_s18 = sphi %s2071_s18, %s2656_s18   ;;  %s2026_s17 = sphi %s2069_s17, %s2655_s17   ;;  %s2022_s16 = sphi %s2067_s16, %s2654_s16   ;;  %s2018_s15 = sphi %s2065_s15, %s2653_s15  }
   0x7   : > { %p41_p0 = scmp.ne.s32.totalorder %s2022_s16, %s2018_s15  ;;  %p2620_p1 = scmp.eq.s32.totalorder %s2086_s19, 0 }
   0x8   : > { %p128_p2 = scmp.eq.s32.totalorder %s2086_s19, 1  ;;  %p134_p3 = scmp.eq.s32.totalorder %s1383_s20, 1 }
   0x9   : > { %p2095_p4 = por %p2620_p1, %p41_p0  ;;  %p1384_p5 = scmp.ge.s32.totalorder %s2030_s18, 1 }
   0xa   : > { %p2100_p6 = por %p134_p3, %p41_p0  ;;  %p141_p7 = scmp.lt.s32.totalorder %s2030_s18, 3 }
   0xb   : > { %s2624_s21 = scalar_select %p2095_p4, 1, 0 }
   0xc   : > { %s2625_s22 = scalar_select %p2100_p6, 1, 0 }
   0xd   : > { %p2105_p8 = pnand %p1384_p5, %p141_p7  ;;  %s2032_s24 = smov [#allocation5]  }
   0xe   : > { %s153_s25 = sshll.u32 %s2032_s24, 4  ;;  %s2033_s27 = smov [#allocation7]   ;;  %s154_s25 = int_to_ptr.vmem [resolvable:$true] %s153_s25 }
   0xf   : > { %s2626_s23 = scalar_select %p2105_p8, 1, 0 }
  0x10   : > { %p1823_p9 = pneg %p2105_p8  ;;  %s166_s28 = sshll.u32 %s2033_s27, 4  ;;  %s167_s28 = int_to_ptr.vmem [resolvable:$true] %s166_s28 }
  0x11   : > { %s1893_s29 = scalar_lea.vmem %s154_s25, 6144  ;;  %p1901_p5 = scmp.lt.s32.totalorder %s154_s25, %s154_s25 }
  0x12   : > { %p2114_p11 = pnand %p1823_p9, %p2620_p1  ;;  %p1894_p13 = scmp.ne.s32.totalorder %s154_s25, %s1893_s29 }
  0x13   : > { %p1902_p7 = scmp.lt.s32.totalorder %s1893_s29, %s1893_s29 }
  0x14   : > { %p1884_p12 = pneg %p2114_p11 }
  0x15   : > { %p1903_p10 = por %p1902_p7, %p1901_p5 }
  0x16   : > { %p1896_p0 = pnand %p1894_p13, %p1884_p12 }
  0x18   : > { %p1897_p3 = pneg %p1896_p0 }
  0x1a   : > { %p1904_p9 = pnand %p1903_p10, %p1897_p3 }
  0x1c   : > { %1907 = shalt.err (!%p1904_p9)
}
  0x1d   : > { %s2034_s30 = smov 128   ;;  %s2035_s5 = smov 8  }
  0x1e   : > { %1826 = dma.hbm_to_vmem [thread:$0]  (!%p2114_p11), %s2616_s1, 6144, %s154_s25, [#allocation6], %s2034_s30, %s2034_s30, %s2035_s5  }
  0x1f   : > { %s1919_s8 = scalar_lea.vmem %s167_s28, 6144  ;;  %p1927_p10 = scmp.lt.s32.totalorder %s167_s28, %s167_s28 }
  0x20   : > { %p1920_p13 = scmp.ne.s32.totalorder %s167_s28, %s1919_s8  ;;  %p1928_p3 = scmp.lt.s32.totalorder %s1919_s8, %s1919_s8 }
  0x22   : > { %p1922_p0 = pnand %p1920_p13, %p1884_p12  ;;  %p1929_p7 = por %p1928_p3, %p1927_p10 }
  0x24   : > { %p1923_p5 = pneg %p1922_p0 }
  0x26   : > { %p1930_p9 = pnand %p1929_p7, %p1923_p5 }
  0x28   : > { %1933 = shalt.err (!%p1930_p9)
}
  0x29   : > { %1829 = dma.hbm_to_vmem [thread:$0]  (!%p2114_p11), %s2617_s2, 6144, %s167_s28, [#allocation6], %s2034_s30, %s2034_s30, %s2035_s5  }
  0x2a   : > { %s2143_s11 = sadd.s32 1, %s2030_s18   ;;  %s28_s12 = sadd.s32 1, %s2026_s17 }
  0x2b   : > { %s25_s13 = ssub.s32 %s2030_s18, %s2143_s11  ;;  %p35_p12 = scmp.ne.s32.totalorder %s2026_s17, %s2022_s16 }
  0x2c   : > { %p26_p13 = scmp.eq.s32.totalorder %s25_s13, 0  ;;  %p36_p0 = scmp.eq.s32.totalorder %s2030_s18, 0 }
  0x2d   : > { %p2153_p5 = por %p128_p2, %p35_p12  ;;  %p1840_p10 = scmp.lt.s32.totalorder %s2030_s18, 2 }
  0x2e   : > { %s2159_s20 = scalar_select %p26_p13, %s2026_s17, %s28_s12  }
  0x2f   : > { %s2628_s14 = scalar_select %p2153_p5, 1, 0 }
  0x30   : > { %p37_p3 = por %p36_p0, %p35_p12  ;;  %s183_s24 = sand.u32 1, %s2026_s17  }
  0x31   : > { %s1388_s25 = sshll.u32 %s183_s24, 6  ;;  %s1401_s26 = sshll.u32 %s2030_s18, 10 }
  0x32   : > { %s2166_s29 = scalar_lea.hbm %s2615_s0, %s1401_s26  ;;  %s187_s6 = scalar_lea.vmem [#allocation2], %s1388_s25 }
  0x33   : > { %s194_s7 = sshll.u32 %s187_s6, 4  ;;  %p2170_p2 = pnand %p1840_p10, %p37_p3  ;;  %s2168_s7 = int_to_ptr.vmem [resolvable:$true] %s194_s7 }
  0x34   : > { %s2174_s9 = scalar_lea.sflag [#allocation3], %s183_s24  ;;  %s1934_s10 = scalar_lea.hbm %s2166_s29, 1024 }
  0x35   : > { %p1935_p11 = scmp.ne.s32.totalorder %s2166_s29, %s1934_s10  ;;  %p1936_p7 = pneg %p2170_p2 }
  0x36   : > { %s1939_s25 = scalar_lea.hbm %s2615_s0, 2048  ;;  %p1940_p13 = scmp.lt.s32.totalorder %s2166_s29, %s2615_s0 }
  0x37   : > { %p1937_p9 = pnand %p1936_p7, %p1935_p11  ;;  %p1941_p0 = scmp.lt.s32.totalorder %s1939_s25, %s1934_s10 }
  0x39   : > { %p1938_p12 = pneg %p1937_p9  ;;  %p1942_p10 = por %p1941_p0, %p1940_p13 }
  0x3b   : > { %p1943_p3 = pnand %p1942_p10, %p1938_p12 }
  0x3d   : > { %1946 = shalt.err (!%p1943_p3)
}
  0x3e   : > { %s1947_s24 = scalar_lea.vmem %s2168_s7, 1024  ;;  %s2036_s28 = smov [#allocation2]  }
  0x3f   : > { %p1948_p1 = scmp.ne.s32.totalorder %s2168_s7, %s1947_s24  ;;  %s1952_s6 = sshll.u32 %s2036_s28, 4  ;;  %s1953_s6 = int_to_ptr.vmem [resolvable:$false] %s1952_s6 }
  0x40   : > { %s1954_s12 = scalar_lea.vmem %s1953_s6, 2048  ;;  %p1955_p9 = scmp.lt.s32.totalorder %s2168_s7, %s1953_s6 }
  0x41   : > { %p1950_p6 = pnand %p1948_p1, %p1936_p7  ;;  %p1956_p5 = scmp.lt.s32.totalorder %s1954_s12, %s1947_s24 }
  0x43   : > { %p1951_p11 = pneg %p1950_p6  ;;  %p1957_p4 = por %p1956_p5, %p1955_p9 }
  0x45   : > { %p1958_p8 = pnand %p1957_p4, %p1951_p11 }
  0x47   : > { %1961 = shalt.err (!%p1958_p8)
}
  0x48   : > { %1833 = dma.hbm_to_vmem [thread:$0]  (!%p2170_p2), %s2166_s29, 1024, %s2168_s7, %s2174_s9, %s2034_s30, %s2034_s30, %s2035_s5  }
  0x49   : > { %p2630_p1 = scmp.ne.s32.totalorder %s2626_s23, 0 }
  0x4a   : > { %s2201_s10 = sand.u32 (!%p2630_p1), 1, %s2022_s16   ;;  %p2631_p4 = scmp.ne.s32.totalorder (!%p2630_p1), %s2624_s21, 0 }
  0x4b   : > { %206 = sbr.rel (%p2630_p1) target bundleno = 617 (0x269), region = 36  ;;  %s1392_s13 = sshll.u32 (!%p2630_p1), %s2201_s10, 6 }
  0x4c   : > { %s209_s25 = scalar_lea.sflag (!%p2630_p1), [#allocation3], %s2201_s10  ;;  %s2207_s8 = scalar_lea.vmem (!%p2630_p1), [#allocation2], %s1392_s13 }
  0x50   : > { %2005 = dma.done.wait (%p2631_p4), %s209_s25, 1024  }
  0x51   : > { %2007 = vsyncadd (%p2631_p4), %s209_s25, 4294966272  ;;  %p2632_p6 = scmp.eq.s32.totalorder %s2086_s19, 0 }
  0x53   : > { %2009 = dma.done.wait (%p2632_p6), [#allocation6], 12288   ;;  %p2633_p8 = pmov %p2632_p6 }
  0x54   : > { %v392_v0 = vld [vmem:[#allocation5 + $0x78] sm:$0xff]  ;;  %v391_v1 = vld [vmem:[#allocation5 + $0x70] sm:$0xff]  ;;  %v390_v2 = vld [vmem:[#allocation5 + $0x68] sm:$0xff]  ;;  %s2530_s30 = scalar_lea.vmem [#allocation8], %s1392_s13  ;;  %s1402_s5 = sshll.u32 %s2086_s19, 10 }
  0x55   : > { %2011 = vsyncadd (%p2633_p8), [#allocation6], 4294955008  ;;  %1547 = vmatprep.subr.mxu0 %v392_v0  ;;  %v531_v3 = vld [vmem:[#allocation5 + $0x178] sm:$0xff]  ;;  %v530_v4 = vld [vmem:[#allocation5 + $0x170] sm:$0xff]  ;;  %s1291_s29 = sshll.u32 %s2530_s30, 4  ;;  %s2568_s26 = scalar_lea.hbm %s2619_s4, %s1402_s5  ;;  %s2570_s29 = int_to_ptr.vmem [resolvable:$true] %s1291_s29 }
  0x56   : > { %1548 = vmatpush3.msra.mxu0 %v392_v0  ;;  %1591 = vmatprep.subr.mxu1 %v531_v3  ;;  %v389_v5 = vld [vmem:[#allocation5 + $0x60] sm:$0xff]  ;;  %v529_v6 = vld [vmem:[#allocation5 + $0x168] sm:$0xff]  ;;  %v388_v7 = vld [vmem:[#allocation5 + $0x58] sm:$0xff]  ;;  %s1278_s19 = scalar_lea.sflag [#allocation4], %s2201_s10  ;;  %s1962_s27 = scalar_lea.vmem %s2570_s29, 1024 }
  0x57   : > { %1549 = vmatprep.subr.mxu0 %v391_v1  ;;  %1592 = vmatpush3.msra.mxu1 %v531_v3  ;;  %v528_v8 = vld [vmem:[#allocation5 + $0x160] sm:$0xff]  ;;  %v387_v9 = vld [vmem:[#allocation5 + $0x50] sm:$0xff]  ;;  %v527_v10 = vld [vmem:[#allocation5 + $0x158] sm:$0xff]  ;;  %p1963_p5 = scmp.ne.s32.totalorder %s2570_s29, %s1962_s27  ;;  %p2650_p2 = scmp.ne.s32.totalorder %s2628_s14, 0 }
  0x58   : > { %1550 = vmatpush3.msra.mxu0 %v391_v1  ;;  %1593 = vmatprep.subr.mxu1 %v530_v4  ;;  %v386_v11 = vld [vmem:[#allocation5 + $0x48] sm:$0xff]  ;;  %v526_v12 = vld [vmem:[#allocation5 + $0x150] sm:$0xff]  ;;  %v385_v13 = vld [vmem:[#allocation5 + $0x40] sm:$0xff]  ;;  %s2037_s24 = smov [#allocation8]  }
  0x59   : > { %1551 = vmatprep.subr.mxu0 %v390_v2  ;;  %1594 = vmatpush3.msra.mxu1 %v530_v4  ;;  %v525_v14 = vld [vmem:[#allocation5 + $0x148] sm:$0xff]  ;;  %v384_v15 = vld [vmem:[#allocation5 + $0x38] sm:$0xff]  ;;  %v524_v16 = vld [vmem:[#allocation5 + $0x140] sm:$0xff]  ;;  %p1964_p7 = pnand %p1963_p5, %p2650_p2  ;;  %s1966_s28 = sshll.u32 %s2037_s24, 4  ;;  %s1967_s28 = int_to_ptr.vmem [resolvable:$false] %s1966_s28 }
  0x5a   : > { %1552 = vmatpush3.msra.mxu0 %v390_v2  ;;  %1595 = vmatprep.subr.mxu1 %v529_v6  ;;  %v383_v17 = vld [vmem:[#allocation5 + $0x30] sm:$0xff]  ;;  %v2218_v18 = vld [vmem:[%s2207_s8] sm:$0xff]  ;;  %v523_v19 = vld [vmem:[#allocation5 + $0x138] sm:$0xff]  ;;  %s1968_s6 = scalar_lea.vmem %s1967_s28, 2048  ;;  %p1969_p13 = scmp.lt.s32.totalorder %s2570_s29, %s1967_s28 }
  0x5b   : > { %1553 = vmatprep.subr.mxu0 %v389_v5  ;;  %1596 = vmatpush3.msra.mxu1 %v529_v6  ;;  %v382_v20 = vld [vmem:[#allocation5 + $0x28] sm:$0xff]  ;;  %v522_v21 = vld [vmem:[#allocation5 + $0x130] sm:$0xff]  ;;  %v381_v22 = vld [vmem:[#allocation5 + $0x20] sm:$0xff]  ;;  %p1965_p12 = pneg %p1964_p7  ;;  %p1970_p0 = scmp.lt.s32.totalorder %s1968_s6, %s1962_s27 }
  0x5c   : > { %1554 = vmatpush3.msra.mxu0 %v389_v5  ;;  %1597 = vmatprep.subr.mxu1 %v528_v8  ;;  %v521_v23 = vld [vmem:[#allocation5 + $0x128] sm:$0xff]  ;;  %v380_v24 = vld [vmem:[#allocation5 + $0x18] sm:$0xff]  ;;  %v520_v25 = vld [vmem:[#allocation5 + $0x120] sm:$0xff] }
  0x5d   : > { %1555 = vmatprep.subr.mxu0 %v388_v7  ;;  %1598 = vmatpush3.msra.mxu1 %v528_v8  ;;  %v379_v26 = vld [vmem:[#allocation5 + $0x10] sm:$0xff]  ;;  %v519_v27 = vld [vmem:[#allocation5 + $0x118] sm:$0xff]  ;;  %v378_v28 = vld [vmem:[#allocation5 + $0x8] sm:$0xff]  ;;  %p1971_p10 = por %p1970_p0, %p1969_p13 }
  0x5e   : > { %1556 = vmatpush3.msra.mxu0 %v388_v7  ;;  %1599 = vmatprep.subr.mxu1 %v527_v10  ;;  %v518_v29 = vld [vmem:[#allocation5 + $0x110] sm:$0xff]  ;;  %v377_v30 = vld [vmem:[#allocation5] sm:$0xff]  ;;  %v517_v31 = vld [vmem:[#allocation5 + $0x108] sm:$0xff] }
  0x5f   : > { %1557 = vmatprep.subr.mxu0 %v387_v9  ;;  %1600 = vmatpush3.msra.mxu1 %v527_v10  ;;  %v2222_v32 = vld [vmem:[%s2207_s8 + $0x8] sm:$0xff]  ;;  %v514_v33 = vld [vmem:[#allocation5 + $0xf8] sm:$0xff]  ;;  %v2225_v34 = vld [vmem:[%s2207_s8 + $0x10] sm:$0xff]  ;;  %p1972_p3 = pnand %p1971_p10, %p1965_p12 }
  0x60   : > { %1558 = vmatpush3.msra.mxu0 %v387_v9  ;;  %1601 = vmatprep.subr.mxu1 %v526_v12  ;;  %v513_v35 = vld [vmem:[#allocation5 + $0xf0] sm:$0xff]  ;;  %v516_v36 = vld [vmem:[#allocation5 + $0x100] sm:$0xff]  ;;  %v2230_v37 = vld [vmem:[%s2207_s8 + $0x18] sm:$0xff] }
  0x61   : > { %1559 = vmatprep.subr.mxu0 %v386_v11  ;;  %1602 = vmatpush3.msra.mxu1 %v526_v12  ;;  %v512_v38 = vld [vmem:[#allocation5 + $0xe8] sm:$0xff]  ;;  %v2233_v39 = vld [vmem:[%s2207_s8 + $0x20] sm:$0xff]  ;;  %v510_v42 = vld [vmem:[#allocation5 + $0xd8] sm:$0xff] }
  0x62   : > { %1560 = vmatpush3.msra.mxu0 %v386_v11  ;;  %1603 = vmatprep.subr.mxu1 %v525_v14  ;;  %v511_v40 = vld [vmem:[#allocation5 + $0xe0] sm:$0xff]  ;;  %v2238_v41 = vld [vmem:[%s2207_s8 + $0x28] sm:$0xff]  ;;  %v2241_v43 = vld [vmem:[%s2207_s8 + $0x30] sm:$0xff] }
  0x63   : > { %1561 = vmatprep.subr.mxu0 %v385_v13  ;;  %1604 = vmatpush3.msra.mxu1 %v525_v14  ;;  %v509_v44 = vld [vmem:[#allocation5 + $0xd0] sm:$0xff]  ;;  %v2247_v45 = vld [vmem:[%s2207_s8 + $0x38] sm:$0xff]  ;;  %v508_v46 = vld [vmem:[#allocation5 + $0xc8] sm:$0xff] }
  0x64   : > { %1562 = vmatpush3.msra.mxu0 %v385_v13  ;;  %1605 = vmatprep.subr.mxu1 %v524_v16  ;;  %v507_v47 = vld [vmem:[#allocation5 + $0xc0] sm:$0xff]  ;;  %v506_v48 = vld [vmem:[#allocation5 + $0xb8] sm:$0xff]  ;;  %v505_v49 = vld [vmem:[#allocation5 + $0xb0] sm:$0xff] }
  0x65   : > { %1563 = vmatprep.subr.mxu0 %v384_v15  ;;  %1606 = vmatpush3.msra.mxu1 %v524_v16  ;;  %v504_v50 = vld [vmem:[#allocation5 + $0xa8] sm:$0xff]  ;;  %v503_v51 = vld [vmem:[#allocation5 + $0xa0] sm:$0xff]  ;;  %v502_v52 = vld [vmem:[#allocation5 + $0x98] sm:$0xff] }
  0x66   : > { %1564 = vmatpush3.msra.mxu0 %v384_v15  ;;  %1579 = vmatprep.mubr.f32.mxu0 %v2218_v18  ;;  %v501_v53 = vld [vmem:[#allocation5 + $0x90] sm:$0xff]  ;;  %v500_v54 = vld [vmem:[#allocation5 + $0x88] sm:$0xff]  ;;  %v499_v55 = vld [vmem:[#allocation5 + $0x80] sm:$0xff] }
  0x67   : > { %1565 = vmatprep.subr.mxu0 %v383_v17  ;;  %1607 = vmatprep.subr.mxu1 %v523_v19  ;;  %v835_v56 = vld [vmem:[#allocation7 + $0x78] sm:$0xff]  ;;  %v834_v58 = vld [vmem:[#allocation7 + $0x70] sm:$0xff]  ;;  %v833_v60 = vld [vmem:[#allocation7 + $0x68] sm:$0xff] }
  0x68   : > { %1566 = vmatpush3.msra.mxu0 %v383_v17  ;;  %1608 = vmatpush3.msra.mxu1 %v523_v19  ;;  %v974_v57 = vld [vmem:[#allocation7 + $0x178] sm:$0xff]  ;;  %v973_v59 = vld [vmem:[#allocation7 + $0x170] sm:$0xff]  ;;  %v972_v61 = vld [vmem:[#allocation7 + $0x168] sm:$0xff] }
  0x69   : > { %1567 = vmatprep.subr.mxu0 %v382_v20  ;;  %1609 = vmatprep.subr.mxu1 %v522_v21  ;;  %v832_v62 = vld [vmem:[#allocation7 + $0x60] sm:$0xff]  ;;  %v831_v0 = vld [vmem:[#allocation7 + $0x58] sm:$0xff]  ;;  %v830_v2 = vld [vmem:[#allocation7 + $0x50] sm:$0xff] }
  0x6a   : > { %1568 = vmatpush3.msra.mxu0 %v382_v20  ;;  %1610 = vmatpush3.msra.mxu1 %v522_v21  ;;  %v971_v63 = vld [vmem:[#allocation7 + $0x160] sm:$0xff]  ;;  %v970_v1 = vld [vmem:[#allocation7 + $0x158] sm:$0xff]  ;;  %v969_v3 = vld [vmem:[#allocation7 + $0x150] sm:$0xff] }
  0x6b   : > { %1569 = vmatprep.subr.mxu0 %v381_v22  ;;  %1611 = vmatprep.subr.mxu1 %v521_v23  ;;  %v829_v4 = vld [vmem:[#allocation7 + $0x48] sm:$0xff]  ;;  %v828_v6 = vld [vmem:[#allocation7 + $0x40] sm:$0xff]  ;;  %v827_v8 = vld [vmem:[#allocation7 + $0x38] sm:$0xff] }
  0x6c   : > { %1570 = vmatpush3.msra.mxu0 %v381_v22  ;;  %1612 = vmatpush3.msra.mxu1 %v521_v23  ;;  %v968_v5 = vld [vmem:[#allocation7 + $0x148] sm:$0xff]  ;;  %v967_v7 = vld [vmem:[#allocation7 + $0x140] sm:$0xff]  ;;  %v966_v9 = vld [vmem:[#allocation7 + $0x138] sm:$0xff] }
  0x6d   : > { %1571 = vmatprep.subr.mxu0 %v380_v24  ;;  %1613 = vmatprep.subr.mxu1 %v520_v25  ;;  %v826_v10 = vld [vmem:[#allocation7 + $0x30] sm:$0xff]  ;;  %v825_v12 = vld [vmem:[#allocation7 + $0x28] sm:$0xff]  ;;  %v824_v14 = vld [vmem:[#allocation7 + $0x20] sm:$0xff] }
  0x6e   : > { %1572 = vmatpush3.msra.mxu0 %v380_v24  ;;  %1614 = vmatpush3.msra.mxu1 %v520_v25  ;;  %v965_v11 = vld [vmem:[#allocation7 + $0x130] sm:$0xff]  ;;  %v964_v13 = vld [vmem:[#allocation7 + $0x128] sm:$0xff]  ;;  %v963_v15 = vld [vmem:[#allocation7 + $0x120] sm:$0xff] }
  0x6f   : > { %1573 = vmatprep.subr.mxu0 %v379_v26  ;;  %1615 = vmatprep.subr.mxu1 %v519_v27  ;;  %v823_v16 = vld [vmem:[#allocation7 + $0x18] sm:$0xff]  ;;  %v822_v19 = vld [vmem:[#allocation7 + $0x10] sm:$0xff]  ;;  %v821_v21 = vld [vmem:[#allocation7 + $0x8] sm:$0xff] }
  0x70   : > { %1574 = vmatpush3.msra.mxu0 %v379_v26  ;;  %1616 = vmatpush3.msra.mxu1 %v519_v27  ;;  %v962_v17 = vld [vmem:[#allocation7 + $0x118] sm:$0xff]  ;;  %v961_v20 = vld [vmem:[#allocation7 + $0x110] sm:$0xff]  ;;  %v960_v22 = vld [vmem:[#allocation7 + $0x108] sm:$0xff] }
  0x71   : > { %1575 = vmatprep.subr.mxu0 %v378_v28  ;;  %1617 = vmatprep.subr.mxu1 %v518_v29  ;;  %v820_v23 = vld [vmem:[#allocation7] sm:$0xff]  ;;  %v2265_v25 = vld [vmem:[#allocation7 + $0xf8] sm:$0xff] }
  0x72   : > { %1576 = vmatpush3.msra.mxu0 %v378_v28  ;;  %1618 = vmatpush3.msra.mxu1 %v518_v29  ;;  %v959_v24 = vld [vmem:[#allocation7 + $0x100] sm:$0xff] }
  0x73   : > { %1577 = vmatprep.subr.mxu0 %v377_v30  ;;  %1619 = vmatprep.subr.mxu1 %v517_v31 }
  0x74   : > { %1578 = vmatpush3.msra.mxu0 %v377_v30  ;;  %1620 = vmatpush3.msra.mxu1 %v517_v31  ;;  %v256_v30 = vlaneseq }
  0x75   : > { %1580 = vmatmul.mubr.f32.vlgmr.msra.gmra.mxu0 %v2222_v32  ;;  %1635 = vmatprep.subr.mxu0 %v514_v33 }
  0x76   : > { %1636 = vmatpush3.msra.mxu0 %v514_v33  ;;  %1582 = vmatprep.mubr.f32.mxu0 %v2225_v34 }
  0x77   : > { %1637 = vmatprep.subr.mxu0 %v513_v35  ;;  %1621 = vmatprep.subr.mxu1 %v516_v36 }
  0x78   : > { %1638 = vmatpush3.msra.mxu0 %v513_v35  ;;  %1622 = vmatpush3.msra.mxu1 %v516_v36  ;;  %v2280_v36 = vshrl.u32 %v256_v30, 7 }
  0x79   : > { %1583 = vmatmul.mubr.f32.gmra.mxu0 %v2230_v37  ;;  %1639 = vmatprep.subr.mxu0 %v512_v38 }
  0x7a   : > { %1640 = vmatpush3.msra.mxu0 %v512_v38  ;;  %1585 = vmatprep.mubr.f32.mxu0 %v2233_v39  ;;  %vm645_vm0 = vcmp.lt.s32.totalorder %v2280_v36, 1  ;;  %vm662_vm2 = vcmp.lt.s32.totalorder %v2280_v36, 7 }
  0x7b   : > { %1641 = vmatprep.subr.mxu0 %v511_v40  ;;  %1623 = vmatprep.mubr.f32.mxu1 %v2218_v18 }
  0x7c   : > { %1642 = vmatpush3.msra.mxu0 %v511_v40  ;;  %1624 = vmatmul.mubr.f32.vlgmr.msra.gmra.mxu1 %v2222_v32 }
  0x7d   : > { %1586 = vmatmul.mubr.f32.gmra.mxu0 %v2238_v41  ;;  %1643 = vmatprep.subr.mxu0 %v510_v42 }
  0x7e   : > { %1644 = vmatpush3.msra.mxu0 %v510_v42  ;;  %1588 = vmatprep.mubr.f32.mxu0 %v2241_v43  ;;  %v259_v42 = vadd.s32 16, %v2280_v36 }
  0x7f   : > { %1645 = vmatprep.subr.mxu0 %v509_v44  ;;  %1626 = vmatprep.mubr.f32.mxu1 %v2225_v34 }
  0x80   : > { %1646 = vmatpush3.msra.mxu0 %v509_v44  ;;  %1627 = vmatmul.mubr.f32.gmra.mxu1 %v2230_v37 }
  0x81   : > { %1589 = vmatmul.mubr.f32.gmra.mxu0 %v2247_v45  ;;  %1647 = vmatprep.subr.mxu0 %v508_v46 }
  0x82   : > { %1648 = vmatpush3.msra.mxu0 %v508_v46  ;;  %1667 = vmatprep.mubr.f32.mxu0 %v2218_v18 }
  0x83   : > { %1649 = vmatprep.subr.mxu0 %v507_v47  ;;  %1629 = vmatprep.mubr.f32.mxu1 %v2233_v39 }
  0x84   : > { %1650 = vmatpush3.msra.mxu0 %v507_v47  ;;  %1630 = vmatmul.mubr.f32.gmra.mxu1 %v2238_v41  ;;  %v258_v47 = vadd.s32 8, %v2280_v36 }
  0x85   : > { %1651 = vmatprep.subr.mxu0 %v506_v48  ;;  %1632 = vmatprep.mubr.f32.mxu1 %v2241_v43 }
  0x86   : > { %1652 = vmatpush3.msra.mxu0 %v506_v48  ;;  %1679 = vmatprep.subr.mxu1 %v835_v56  ;;  %v261_v48 = vadd.s32 32, %v2280_v36 }
  0x87   : > { %1653 = vmatprep.subr.mxu0 %v505_v49  ;;  %1680 = vmatpush3.msra.mxu1 %v835_v56  ;;  %v2300_v56 = vadd.s32 48, %v2280_v36 }
  0x88   : > { %1654 = vmatpush3.msra.mxu0 %v505_v49  ;;  %1633 = vmatmul.mubr.f32.gmra.mxu1 %v2247_v45  ;;  %v283_v49 = vand.u32 15, %v259_v42 }
  0x89   : > { %1655 = vmatprep.subr.mxu0 %v504_v50  ;;  %1681 = vmatprep.subr.mxu1 %v834_v58 }
  0x8a   : > { %1656 = vmatpush3.msra.mxu0 %v504_v50  ;;  %1682 = vmatpush3.msra.mxu1 %v834_v58  ;;  %v2305_v58 = vadd.s32 56, %v2280_v36  ;;  %vm2310_vm1 = vcmp.ne.s32.totalorder %v283_v49, 0 }
  0x8b   : > { %1657 = vmatprep.subr.mxu0 %v503_v51  ;;  %1683 = vmatprep.subr.mxu1 %v833_v60 }
  0x8c   : > { %1658 = vmatpush3.msra.mxu0 %v503_v51  ;;  %1684 = vmatpush3.msra.mxu1 %v833_v60 }
  0x8d   : > { %1659 = vmatprep.subr.mxu0 %v502_v52  ;;  %1685 = vmatprep.subr.mxu1 %v832_v62 }
  0x8e   : > { %1660 = vmatpush3.msra.mxu0 %v502_v52  ;;  %1686 = vmatpush3.msra.mxu1 %v832_v62  ;;  %v269_v52 = vand.u32 15, %v2280_v36 }
  0x8f   : > { %1661 = vmatprep.subr.mxu0 %v501_v53  ;;  %1687 = vmatprep.subr.mxu1 %v831_v0 }
  0x90   : > { %1662 = vmatpush3.msra.mxu0 %v501_v53  ;;  %1688 = vmatpush3.msra.mxu1 %v831_v0  ;;  %v276_v53 = vand.u32 15, %v258_v47  ;;  %vm2318_vm3 = vcmp.ne.s32.totalorder %v269_v52, 0 }
  0x91   : > { %1663 = vmatprep.subr.mxu0 %v500_v54  ;;  %1689 = vmatprep.subr.mxu1 %v830_v2 }
  0x92   : > { %1664 = vmatpush3.msra.mxu0 %v500_v54  ;;  %1690 = vmatpush3.msra.mxu1 %v830_v2  ;;  %v260_v54 = vadd.s32 24, %v2280_v36  ;;  %vm2322_vm4 = vcmp.ne.s32.totalorder %v276_v53, 15 }
  0x93   : > { %1665 = vmatprep.subr.mxu0 %v499_v55  ;;  %1691 = vmatprep.subr.mxu1 %v829_v4 }
  0x94   : > { %1666 = vmatpush3.msra.mxu0 %v499_v55  ;;  %1692 = vmatpush3.msra.mxu1 %v829_v4  ;;  %v297_v55 = vand.u32 15, %v261_v48  ;;  %v290_v4 = vand.u32 15, %v260_v54 }
  0x95   : > { %1668 = vmatmul.mubr.f32.vlgmr.msra.gmra.mxu0 %v2222_v32  ;;  %1723 = vmatprep.subr.mxu0 %v974_v57 }
  0x96   : > { %1670 = vmatprep.mubr.f32.mxu0 %v2225_v34  ;;  %1724 = vmatpush3.msra.mxu0 %v974_v57  ;;  %v262_v57 = vadd.s32 40, %v2280_v36  ;;  %vm2326_vm5 = vcmp.ne.s32.totalorder %v297_v55, 0  ;;  %vm2357_vm6 = vcmp.ne.s32.totalorder %v290_v4, 15 }
  0x97   : > { %1725 = vmatprep.subr.mxu0 %v973_v59  ;;  %1693 = vmatprep.subr.mxu1 %v828_v6 }
  0x98   : > { %1726 = vmatpush3.msra.mxu0 %v973_v59  ;;  %1694 = vmatpush3.msra.mxu1 %v828_v6  ;;  %v311_v6 = vand.u32 15, %v2300_v56 }
  0x99   : > { %1671 = vmatmul.mubr.f32.gmra.mxu0 %v2230_v37  ;;  %1727 = vmatprep.subr.mxu0 %v972_v61 }
  0x9a   : > { %1673 = vmatprep.mubr.f32.mxu0 %v2233_v39  ;;  %1728 = vmatpush3.msra.mxu0 %v972_v61  ;;  %vm2394_vm8 = vcmp.ne.s32.totalorder %v311_v6, 0 }
  0x9b   : > { %1729 = vmatprep.subr.mxu0 %v971_v63  ;;  %1695 = vmatprep.subr.mxu1 %v827_v8 }
  0x9c   : > { %1730 = vmatpush3.msra.mxu0 %v971_v63  ;;  %1696 = vmatpush3.msra.mxu1 %v827_v8 }
  0x9d   : > { %1674 = vmatmul.mubr.f32.gmra.mxu0 %v2238_v41  ;;  %1731 = vmatprep.subr.mxu0 %v970_v1 }
  0x9e   : > { %1676 = vmatprep.mubr.f32.mxu0 %v2241_v43  ;;  %1732 = vmatpush3.msra.mxu0 %v970_v1 }
  0x9f   : > { %1733 = vmatprep.subr.mxu0 %v969_v3  ;;  %1697 = vmatprep.subr.mxu1 %v826_v10 }
  0xa0   : > { %1734 = vmatpush3.msra.mxu0 %v969_v3  ;;  %1698 = vmatpush3.msra.mxu1 %v826_v10 }
  0xa1   : > { %1677 = vmatmul.mubr.f32.gmra.mxu0 %v2247_v45  ;;  %1735 = vmatprep.subr.mxu0 %v968_v5 }
  0xa2   : > { %1736 = vmatpush3.msra.mxu0 %v968_v5  ;;  %1699 = vmatprep.subr.mxu1 %v825_v12 }
  0xa3   : > { %1737 = vmatprep.subr.mxu0 %v967_v7  ;;  %1700 = vmatpush3.msra.mxu1 %v825_v12  ;;  %v318_v12 = vand.u32 15, %v2305_v58 }
  0xa4   : > { %1738 = vmatpush3.msra.mxu0 %v967_v7  ;;  %1701 = vmatprep.subr.mxu1 %v824_v14 }
  0xa5   : > { %1739 = vmatprep.subr.mxu0 %v966_v9  ;;  %1702 = vmatpush3.msra.mxu1 %v824_v14  ;;  %vm2419_vm9 = vcmp.ne.s32.totalorder %v318_v12, 15 }
  0xa6   : > { %1740 = vmatpush3.msra.mxu0 %v966_v9  ;;  %1703 = vmatprep.subr.mxu1 %v823_v16  ;;  %v802_v9 = vsub.s32 0, %v2280_v36 }
  0xa7   : > { %1741 = vmatprep.subr.mxu0 %v965_v11  ;;  %1704 = vmatpush3.msra.mxu1 %v823_v16 }
  0xa8   : > { %1742 = vmatpush3.msra.mxu0 %v965_v11  ;;  %1705 = vmatprep.subr.mxu1 %v822_v19  ;;  %v304_v11 = vand.u32 15, %v262_v57 }
  0xa9   : > { %1743 = vmatprep.subr.mxu0 %v964_v13  ;;  %1706 = vmatpush3.msra.mxu1 %v822_v19 }
  0xaa   : > { %1744 = vmatpush3.msra.mxu0 %v964_v13  ;;  %1707 = vmatprep.subr.mxu1 %v821_v21  ;;  %vm2369_vm7 = vcmp.ne.s32.totalorder %v304_v11, 15 }
  0xab   : > { %1745 = vmatprep.subr.mxu0 %v963_v15  ;;  %1708 = vmatpush3.msra.mxu1 %v821_v21 }
  0xac   : > { %1746 = vmatpush3.msra.mxu0 %v963_v15  ;;  %1709 = vmatprep.subr.mxu1 %v820_v23  ;;  %v2343_v15 = vld [vmem:[%s2618_s3] sm:$0x3] }
  0xad   : > { %1747 = vmatprep.subr.mxu0 %v962_v17  ;;  %1710 = vmatpush3.msra.mxu1 %v820_v23  ;;  %v2365_v30 = vrot.slane %v2343_v15, %v802_v9 }
  0xae   : > { %1748 = vmatpush3.msra.mxu0 %v962_v17  ;;  %1767 = vmatprep.subr.mxu1 %v2265_v25 }
  0xaf   : > { %1749 = vmatprep.subr.mxu0 %v961_v20 }
  0xb0   : > { %1750 = vmatpush3.msra.mxu0 %v961_v20 }
  0xb1   : > { %1751 = vmatprep.subr.mxu0 %v960_v22 }
  0xb2   : > { %1752 = vmatpush3.msra.mxu0 %v960_v22 }
  0xb3   : > { %1753 = vmatprep.subr.mxu0 %v959_v24 }
  0xb4   : > { %1754 = vmatpush3.msra.mxu0 %v959_v24 }
 0x135   : > { %v2268_v26 = vpop.f32.mrf.mxu0 }
 0x136   : > { %v638_v63 = vrot.slane %v2268_v26, 7 }
 0x137   : > { %v459_v27 = vpop.f32.mrf.mxu0 }
 0x138   : > { %v637_v0 = vrot.slane %v459_v27, 7 }
 0x139   : > { %v2270_v28 = vpop.f32.mrf.mxu0 }
 0x13a   : > { %v640_v19 = vrot.slane %v2270_v28, 7  ;;  %v652_v22 = vsel %vm645_vm0, %v637_v0, %v638_v63 }
 0x13b   : > { %v2274_v31 = vpop.f32.mrf.mxu0 }
 0x13c   : > { %v2272_v29 = vpop.f32.mrf.mxu1  ;;  %v639_v7 = vrot.slane %v2274_v31, 7 }
 0x13d   : > { %v2282_v38 = vpop.f32.mrf.mxu0  ;;  %v655_v60 = vrot.slane %v2272_v29, 1 }
 0x13e   : > { %v2276_v33 = vpop.f32.mrf.mxu1  ;;  %v642_v47 = vrot.slane %v2282_v38, 7  ;;  %v650_v49 = vsel %vm645_vm0, %v639_v7, %v640_v19 }
 0x13f   : > { %v2287_v44 = vpop.f32.mrf.mxu0  ;;  %v654_v21 = vrot.slane %v2276_v33, 1 }
 0x140   : > { %v2278_v35 = vpop.f32.mrf.mxu1  ;;  %v641_v20 = vrot.slane %v2287_v44, 7 }
 0x141   : > { %v2293_v50 = vpop.f32.mrf.mxu0  ;;  %v657_v13 = vrot.slane %v2278_v35, 1  ;;  %v669_v48 = vsel %vm662_vm2, %v654_v21, %v655_v60 }
 0x142   : > { %v2284_v40 = vpop.f32.mrf.mxu1  ;;  %v644_v59 = vrot.slane %v2293_v50, 7  ;;  %v649_v52 = vsel %vm645_vm0, %v640_v19, %v641_v20  ;;  %v648_v9 = vsel %vm645_vm0, %v641_v20, %v642_v47 }
 0x143   : > { %v656_v61 = vrot.slane %v2284_v40, 1  ;;  %v2332_v8 = vpop.f32.mrf.mxu0 }
 0x144   : > { %v2289_v46 = vpop.f32.mrf.mxu1  ;;  %v653_v17 = vsel %vm645_vm0, %v644_v59, %v637_v0  ;;  %v643_v53 = vrot.slane %v2332_v8, 7 }
 0x145   : > { %v668_v16 = vsel %vm662_vm2, %v655_v60, %v656_v61  ;;  %v659_v24 = vrot.slane %v2289_v46, 1  ;;  %v671_v31 = vsel %vm2318_vm3, %v653_v17, 0.0  ;;  %v651_v46 = vsel %vm645_vm0, %v638_v63, %v639_v7 }
 0x146   : > { %v2295_v51 = vpop.f32.mrf.mxu1  ;;  %v785_v28 = vsel %vm2322_vm4, %v668_v16, 0.0  ;;  %v673_v60 = vsel %vm2310_vm1, %v651_v46, 0.0  ;;  %v675_v16 = vsel %vm2326_vm5, %v649_v52, 0.0  ;;  %v647_v6 = vsel %vm645_vm0, %v642_v47, %v643_v53  ;;  %v955_v46 = vld [vmem:[#allocation7 + $0xe8] sm:$0xff] }
 0x147   : > { %v658_v14 = vrot.slane %v2295_v51, 1 }
 0x148   : > { %v2315_v1 = vpop.f32.mrf.mxu1 }
 0x149   : > { %v666_v44 = vsel %vm662_vm2, %v657_v13, %v658_v14  ;;  %v661_v57 = vrot.slane %v2315_v1, 1  ;;  %v667_v1 = vsel %vm662_vm2, %v656_v61, %v657_v13  ;;  %v665_v61 = vsel %vm662_vm2, %v658_v14, %v659_v24 }
 0x14a   : > { %v2335_v10 = vpop.f32.mrf.mxu1  ;;  %v787_v58 = vsel %vm2357_vm6, %v666_v44, 0.0  ;;  %v646_v14 = vsel %vm645_vm0, %v643_v53, %v644_v59  ;;  %v677_v59 = vsel %vm2394_vm8, %v647_v6, 0.0 }
 0x14b   : > { %v660_v29 = vrot.slane %v2335_v10, 1  ;;  %v670_v20 = vsel %vm662_vm2, %v661_v57, %v654_v21 }
 0x14c   : > { %v791_v47 = vsel %vm2419_vm9, %v670_v20, 0.0 }
 0x14d   : > { %v664_v56 = vsel %vm662_vm2, %v659_v24, %v660_v29  ;;  %v663_v50 = vsel %vm662_vm2, %v660_v29, %v661_v57 }
 0x14e   : > { %v789_v11 = vsel %vm2369_vm7, %v664_v56, 0.0  ;;  %v953_v56 = vld [vmem:[#allocation7 + $0xd8] sm:$0xff] }
 0x155   : > { %v1669_v23 = vpop.f32.mrf.mxu0 }
 0x156   : > { %v751_v26 = vadd.f32 %v1669_v23, %v652_v22 }
 0x157   : > { %v745_v33 = vpop.f32.mrf.mxu0 }
 0x158   : > { %v793_v40 = vadd.f32 %v785_v28, %v751_v26  ;;  %v746_v42 = vadd.f32 %v745_v33, %v671_v31 }
 0x159   : > { %v1672_v51 = vpop.f32.mrf.mxu0 }
 0x15a   : > { %v792_v54 = vadd.f32 %v746_v42, %v669_v48  ;;  %v761_v55 = vadd.f32 %v1672_v51, %v650_v49  ;;  %v805_v38 = vadd.f32 %v2365_v30, %v793_v40  ;;  %v956_v40 = vld [vmem:[#allocation7 + $0xf0] sm:$0xff] }
 0x15b   : > { %v755_v63 = vpop.f32.mrf.mxu0 }
 0x15c   : > { %v795_v0 = vadd.f32 %v787_v58, %v761_v55  ;;  %v756_v4 = vadd.f32 %v755_v63, %v673_v60  ;;  %v804_v7 = vadd.f32 %v2365_v30, %v792_v54  ;;  %v2410_v23 = vmax.f32 %v805_v38, 0.0  ;;  %v954_v54 = vld [vmem:[#allocation7 + $0xe0] sm:$0xff]  ;;  %v952_v60 = vld [vmem:[#allocation7 + $0xd0] sm:$0xff] }
 0x15d   : > { %v1675_v10 = vpop.f32.mrf.mxu0 }
 0x15e   : > { %v794_v17 = vadd.f32 %v756_v4, %v667_v1  ;;  %v771_v19 = vadd.f32 %v1675_v10, %v648_v9  ;;  %v2406_v22 = vmax.f32 %v804_v7, 0.0  ;;  %v807_v26 = vadd.f32 %v2365_v30, %v795_v0  ;;  %v951_v0 = vld [vmem:[#allocation7 + $0xc8] sm:$0xff]  ;;  %v950_v7 = vld [vmem:[#allocation7 + $0xc0] sm:$0xff]  ;;  %v948_v1 = vld [vmem:[#allocation7 + $0xb0] sm:$0xff] }
 0x15f   : > { %v765_v13 = vpop.f32.mrf.mxu0  ;;  %v947_v9 = vld [vmem:[#allocation7 + $0xa8] sm:$0xff]  ;;  %v946_v10 = vld [vmem:[#allocation7 + $0xa0] sm:$0xff] }
 0x160   : > { %v797_v28 = vadd.f32 %v789_v11, %v771_v19  ;;  %v766_v31 = vadd.f32 %v765_v13, %v675_v16  ;;  %1711 = vmatprep.mubr.f32.mxu1 %v2406_v22  ;;  %1755 = vmatprep.mubr.f32.mxu0 %v2406_v22  ;;  %v806_v42 = vadd.f32 %v2365_v30, %v794_v17  ;;  %v945_v11 = vld [vmem:[#allocation7 + $0x98] sm:$0xff]  ;;  %v944_v16 = vld [vmem:[#allocation7 + $0x90] sm:$0xff]  ;;  %v943_v17 = vld [vmem:[#allocation7 + $0x88] sm:$0xff] }
 0x161   : > { %v1678_v21 = vpop.f32.mrf.mxu0  ;;  %1712 = vmatmul.mubr.f32.vlgmr.msra.gmra.mxu1 %v2410_v23  ;;  %1756 = vmatmul.mubr.f32.vlgmr.msra.gmra.mxu0 %v2410_v23  ;;  %v942_v19 = vld [vmem:[#allocation7 + $0x80] sm:$0xff] }
 0x162   : > { %v796_v24 = vadd.f32 %v766_v31, %v665_v61  ;;  %v781_v44 = vadd.f32 %v1678_v21, %v646_v14  ;;  %1768 = vmatpush3.msra.mxu1 %v2265_v25  ;;  %v2431_v12 = vmax.f32 %v806_v42, 0.0  ;;  %v809_v49 = vadd.f32 %v2365_v30, %v797_v28 }
 0x163   : > { %1769 = vmatprep.subr.mxu1 %v956_v40  ;;  %v775_v48 = vpop.f32.mrf.mxu0  ;;  %v2441_v25 = vmax.f32 %v807_v26, 0.0 }
 0x164   : > { %v799_v51 = vadd.f32 %v791_v47, %v781_v44  ;;  %v776_v52 = vadd.f32 %v775_v48, %v677_v59  ;;  %1770 = vmatpush3.msra.mxu1 %v956_v40  ;;  %1714 = vmatprep.mubr.f32.mxu1 %v2431_v12  ;;  %v808_v53 = vadd.f32 %v2365_v30, %v796_v24  ;;  %v817_v57 = vmax.f32 %v809_v49, 0.0 }
 0x165   : > { %1758 = vmatprep.mubr.f32.mxu0 %v2431_v12  ;;  %1771 = vmatprep.subr.mxu1 %v955_v46  ;;  %v1243_v47 = vsub.s32 1, %v2280_v36 }
 0x166   : > { %v798_v29 = vadd.f32 %v776_v52, %v663_v50  ;;  %1715 = vmatmul.mubr.f32.gmra.mxu1 %v2441_v25  ;;  %1759 = vmatmul.mubr.f32.gmra.mxu0 %v2441_v25  ;;  %v816_v55 = vmax.f32 %v808_v53, 0.0  ;;  %v811_v58 = vadd.f32 %v2365_v30, %v799_v51 }
 0x167   : > { %1772 = vmatpush3.msra.mxu1 %v955_v46 }
 0x168   : > { %1773 = vmatprep.subr.mxu1 %v954_v54  ;;  %1717 = vmatprep.mubr.f32.mxu1 %v816_v55  ;;  %v810_v38 = vadd.f32 %v2365_v30, %v798_v29  ;;  %v819_v4 = vmax.f32 %v811_v58, 0.0  ;;  %v949_v30 = vld [vmem:[#allocation7 + $0xb8] sm:$0xff] }
 0x169   : > { %1774 = vmatpush3.msra.mxu1 %v954_v54  ;;  %1761 = vmatprep.mubr.f32.mxu0 %v816_v55 }
 0x16a   : > { %1775 = vmatprep.subr.mxu1 %v953_v56  ;;  %1718 = vmatmul.mubr.f32.gmra.mxu1 %v817_v57  ;;  %v818_v63 = vmax.f32 %v810_v38, 0.0 }
 0x16b   : > { %1762 = vmatmul.mubr.f32.gmra.mxu0 %v817_v57  ;;  %1776 = vmatpush3.msra.mxu1 %v953_v56  ;;  %v2482_v56 = vrot.slane %v2343_v15, %v1243_v47 }
 0x16c   : > { %1777 = vmatprep.subr.mxu1 %v952_v60  ;;  %1720 = vmatprep.mubr.f32.mxu1 %v818_v63 }
 0x16d   : > { %1778 = vmatpush3.msra.mxu1 %v952_v60  ;;  %1764 = vmatprep.mubr.f32.mxu0 %v818_v63 }
 0x16e   : > { %1779 = vmatprep.subr.mxu1 %v951_v0  ;;  %1721 = vmatmul.mubr.f32.gmra.mxu1 %v819_v4 }
 0x16f   : > { %1765 = vmatmul.mubr.f32.gmra.mxu0 %v819_v4  ;;  %1780 = vmatpush3.msra.mxu1 %v951_v0 }
 0x170   : > { %1781 = vmatprep.subr.mxu1 %v950_v7  ;;  %1799 = vmatprep.mubr.f32.mxu1 %v2406_v22 }
 0x171   : > { %1782 = vmatpush3.msra.mxu1 %v950_v7 }
 0x172   : > { %1783 = vmatprep.subr.mxu1 %v949_v30 }
 0x173   : > { %1784 = vmatpush3.msra.mxu1 %v949_v30 }
 0x174   : > { %1785 = vmatprep.subr.mxu1 %v948_v1 }
 0x175   : > { %1786 = vmatpush3.msra.mxu1 %v948_v1 }
 0x176   : > { %1787 = vmatprep.subr.mxu1 %v947_v9 }
 0x177   : > { %1788 = vmatpush3.msra.mxu1 %v947_v9 }
 0x178   : > { %1789 = vmatprep.subr.mxu1 %v946_v10 }
 0x179   : > { %1790 = vmatpush3.msra.mxu1 %v946_v10 }
 0x17a   : > { %1791 = vmatprep.subr.mxu1 %v945_v11 }
 0x17b   : > { %1792 = vmatpush3.msra.mxu1 %v945_v11 }
 0x17c   : > { %1793 = vmatprep.subr.mxu1 %v944_v16 }
 0x17d   : > { %1794 = vmatpush3.msra.mxu1 %v944_v16 }
 0x17e   : > { %1795 = vmatprep.subr.mxu1 %v943_v17 }
 0x17f   : > { %1796 = vmatpush3.msra.mxu1 %v943_v17 }
 0x180   : > { %1797 = vmatprep.subr.mxu1 %v942_v19 }
 0x181   : > { %1798 = vmatpush3.msra.mxu1 %v942_v19 }
 0x182   : > { %1800 = vmatmul.mubr.f32.vlgmr.msra.gmra.mxu1 %v2410_v23 }
 0x183   : > { %1802 = vmatprep.mubr.f32.mxu1 %v2431_v12 }
 0x186   : > { %1803 = vmatmul.mubr.f32.gmra.mxu1 %v2441_v25 }
 0x187   : > { %1805 = vmatprep.mubr.f32.mxu1 %v816_v55 }
 0x18a   : > { %1806 = vmatmul.mubr.f32.gmra.mxu1 %v817_v57 }
 0x18b   : > { %1808 = vmatprep.mubr.f32.mxu1 %v818_v63 }
 0x18e   : > { %1809 = vmatmul.mubr.f32.gmra.mxu1 %v819_v4 }
 0x221   : > { %v1713_v22 = vpop.f32.mrf.mxu1  ;;  %v1757_v6 = vpop.f32.mrf.mxu0 }
 0x222   : > { %v1097_v50 = vrot.slane %v1757_v6, 1  ;;  %v1081_v48 = vrot.slane %v1713_v22, 7 }
 0x223   : > { %v902_v61 = vpop.f32.mrf.mxu1  ;;  %v2453_v13 = vpop.f32.mrf.mxu0 }
 0x224   : > { %v1080_v46 = vrot.slane %v902_v61, 7  ;;  %v1096_v51 = vrot.slane %v2453_v13, 1 }
 0x226   : > { %v1716_v20 = vpop.f32.mrf.mxu1  ;;  %v1760_v26 = vpop.f32.mrf.mxu0  ;;  %v1094_v29 = vsel %vm645_vm0, %v1080_v46, %v1081_v48  ;;  %v1110_v15 = vsel %vm662_vm2, %v1096_v51, %v1097_v50 }
 0x227   : > { %v1099_v57 = vrot.slane %v1760_v26, 1  ;;  %v1083_v63 = vrot.slane %v1716_v20, 7 }
 0x228   : > { %v912_v28 = vpop.f32.mrf.mxu1  ;;  %v1051_v31 = vpop.f32.mrf.mxu0 }
 0x229   : > { %v1098_v24 = vrot.slane %v1051_v31, 1  ;;  %v1082_v59 = vrot.slane %v912_v28, 7 }
 0x22a   : > { %v2455_v40 = vpop.f32.mrf.mxu1 }
 0x22b   : > { %v2457_v23 = vpop.f32.mrf.mxu0  ;;  %v1109_v53 = vsel %vm662_vm2, %v1097_v50, %v1098_v24  ;;  %v1093_v60 = vsel %vm645_vm0, %v1081_v48, %v1082_v59  ;;  %v1085_v11 = vrot.slane %v2455_v40, 7  ;;  %v1092_v3 = vsel %vm645_vm0, %v1082_v59, %v1083_v63 }
 0x22c   : > { %v922_v42 = vpop.f32.mrf.mxu1  ;;  %v1226_v4 = vsel %vm2322_vm4, %v1109_v53, 0.0  ;;  %v1101_v16 = vrot.slane %v2457_v23, 1  ;;  %v1114_v2 = vsel %vm2310_vm1, %v1093_v60, 0.0 }
 0x22d   : > { %v2459_v14 = vpop.f32.mrf.mxu0  ;;  %v1084_v38 = vrot.slane %v922_v42, 7 }
 0x22e   : > { %v2461_v21 = vpop.f32.mrf.mxu1  ;;  %v1100_v52 = vrot.slane %v2459_v14, 1  ;;  %v1108_v14 = vsel %vm662_vm2, %v1098_v24, %v1099_v57 }
 0x22f   : > { %v1087_v44 = vrot.slane %v2461_v21, 7  ;;  %v2464_v12 = vpop.f32.mrf.mxu0  ;;  %v1091_v61 = vsel %vm645_vm0, %v1083_v63, %v1084_v38 }
 0x230   : > { %v2467_v49 = vpop.f32.mrf.mxu1  ;;  %v1107_v10 = vsel %vm662_vm2, %v1099_v57, %v1100_v52  ;;  %v1103_v13 = vrot.slane %v2464_v12, 1  ;;  %v1090_v12 = vsel %vm645_vm0, %v1084_v38, %v1085_v11  ;;  %v1116_v47 = vsel %vm2326_vm5, %v1091_v61, 0.0 }
 0x231   : > { %v2471_v25 = vpop.f32.mrf.mxu0  ;;  %v1095_v54 = vsel %vm645_vm0, %v1087_v44, %v1080_v46  ;;  %v1086_v20 = vrot.slane %v2467_v49, 7  ;;  %v1228_v62 = vsel %vm2357_vm6, %v1107_v10, 0.0 }
 0x232   : > { %v1102_v0 = vrot.slane %v2471_v25, 1  ;;  %v1112_v7 = vsel %vm2318_vm3, %v1095_v54, 0.0  ;;  %v1111_v24 = vsel %vm662_vm2, %v1103_v13, %v1096_v51  ;;  %v1106_v51 = vsel %vm662_vm2, %v1100_v52, %v1101_v16 }
 0x233   : > { %v1089_v54 = vsel %vm645_vm0, %v1085_v11, %v1086_v20  ;;  %v1088_v57 = vsel %vm645_vm0, %v1086_v20, %v1087_v44 }
 0x234   : > { %v1105_v26 = vsel %vm662_vm2, %v1101_v16, %v1102_v0  ;;  %v1118_v52 = vsel %vm2394_vm8, %v1089_v54, 0.0  ;;  %v1104_v33 = vsel %vm662_vm2, %v1102_v0, %v1103_v13 }
 0x235   : > { %v1230_v49 = vsel %vm2369_vm7, %v1105_v26, 0.0 }
 0x242   : > { %v1801_v55 = vpop.f32.mrf.mxu1 }
 0x243   : > { %v1192_v58 = vadd.f32 %v1801_v55, %v1094_v29 }
 0x244   : > { %v1186_v30 = vpop.f32.mrf.mxu1 }
 0x245   : > { %v1234_v1 = vadd.f32 %v1226_v4, %v1192_v58  ;;  %v1187_v9 = vadd.f32 %v1186_v30, %v1112_v7  ;;  %v1232_v7 = vsel %vm2419_vm9, %v1111_v24, 0.0 }
 0x246   : > { %v1804_v17 = vpop.f32.mrf.mxu1 }
 0x247   : > { %v1246_v19 = vadd.f32 %v2482_v56, %v1234_v1  ;;  %v1233_v22 = vadd.f32 %v1187_v9, %v1110_v15  ;;  %v1202_v6 = vadd.f32 %v1804_v17, %v1092_v3 }
 0x248   : > { %v1196_v28 = vpop.f32.mrf.mxu1 }
 0x249   : > { %v1254_v31 = vadd.f32 %v1246_v19, %v2222_v32  ;;  %v1245_v40 = vadd.f32 %v2482_v56, %v1233_v22  ;;  %v1236_v23 = vadd.f32 %v1228_v62, %v1202_v6  ;;  %v1197_v42 = vadd.f32 %v1196_v28, %v1114_v2 }
 0x24a   : > { %v1807_v46 = vpop.f32.mrf.mxu1 }
 0x24b   : > { %v1262_v27 = vmax.f32 %v1254_v31, 0.0  ;;  %v1253_v50 = vadd.f32 %v1245_v40, %v2218_v18  ;;  %v1248_v32 = vadd.f32 %v2482_v56, %v1236_v23  ;;  %v1235_v59 = vadd.f32 %v1197_v42, %v1108_v14 }
 0x24c   : > { %v1212_v48 = vadd.f32 %v1807_v46, %v1090_v12  ;;  %v1206_v53 = vpop.f32.mrf.mxu1 }
 0x24d   : > { %1270 = vst [vmem:[%s2530_s30 + $0x8] sm:$0xff] %v1262_v27  ;;  %v1261_v18 = vmax.f32 %v1253_v50, 0.0  ;;  %v1256_v5 = vadd.f32 %v1248_v32, %v2230_v37  ;;  %v1247_v35 = vadd.f32 %v2482_v56, %v1235_v59  ;;  %v1207_v29 = vadd.f32 %v1206_v53, %v1116_v47 }
 0x24e   : > { %v1238_v55 = vadd.f32 %v1230_v49, %v1212_v48  ;;  %v1810_v38 = vpop.f32.mrf.mxu1 }
 0x24f   : > { %1269 = vst [vmem:[%s2530_s30] sm:$0xff] %v1261_v18  ;;  %v1264_v58 = vmax.f32 %v1256_v5, 0.0  ;;  %v1255_v60 = vadd.f32 %v1247_v35, %v2225_v34  ;;  %v1237_v37 = vadd.f32 %v1207_v29, %v1106_v51  ;;  %v1222_v63 = vadd.f32 %v1810_v38, %v1088_v57 }
 0x250   : > { %v1250_v4 = vadd.f32 %v2482_v56, %v1238_v55  ;;  %v1216_v21 = vpop.f32.mrf.mxu1 }
 0x251   : > { %1272 = vst [vmem:[%s2530_s30 + $0x18] sm:$0xff] %v1264_v58  ;;  %v1263_v44 = vmax.f32 %v1255_v60, 0.0  ;;  %v1249_v30 = vadd.f32 %v2482_v56, %v1237_v37  ;;  %v1240_v34 = vadd.f32 %v1232_v7, %v1222_v63  ;;  %v1217_v1 = vadd.f32 %v1216_v21, %v1118_v52 }
 0x252   : > { %v1258_v15 = vadd.f32 %v1250_v4, %v2238_v41 }
 0x253   : > { %1271 = vst [vmem:[%s2530_s30 + $0x10] sm:$0xff] %v1263_v44  ;;  %v1257_v8 = vadd.f32 %v1249_v30, %v2233_v39  ;;  %v1252_v9 = vadd.f32 %v2482_v56, %v1240_v34  ;;  %v1239_v10 = vadd.f32 %v1217_v1, %v1104_v33 }
 0x254   : > { %v1266_v11 = vmax.f32 %v1258_v15, 0.0 }
 0x255   : > { %v1265_v16 = vmax.f32 %v1257_v8, 0.0  ;;  %v1260_v3 = vadd.f32 %v1252_v9, %v2247_v45  ;;  %v1251_v41 = vadd.f32 %v2482_v56, %v1239_v10 }
 0x256   : > { %1274 = vst [vmem:[%s2530_s30 + $0x28] sm:$0xff] %v1266_v11 }
 0x257   : > { %1273 = vst [vmem:[%s2530_s30 + $0x20] sm:$0xff] %v1265_v16  ;;  %v1268_v36 = vmax.f32 %v1260_v3, 0.0  ;;  %v1259_v25 = vadd.f32 %v1251_v41, %v2241_v43 }
 0x259   : > { %1276 = vst [vmem:[%s2530_s30 + $0x38] sm:$0xff] %v1268_v36  ;;  %v1267_v39 = vmax.f32 %v1259_v25, 0.0 }
 0x25b   : > { %1275 = vst [vmem:[%s2530_s30 + $0x30] sm:$0xff] %v1267_v39 }
 0x25c   : > { %1975 = shalt.err (!%p1972_p3)
}
 0x25d   : > { %s1976_s12 = scalar_lea.hbm %s2568_s26, 1024  ;;  %s1980_s8 = scalar_lea.hbm %s2619_s4, 2048 }
 0x25e   : > { %p1977_p11 = scmp.ne.s32.totalorder %s2568_s26, %s1976_s12  ;;  %p1981_p4 = scmp.lt.s32.totalorder %s2568_s26, %s2619_s4 }
 0x25f   : > { %p1982_p6 = scmp.lt.s32.totalorder %s1980_s8, %s1976_s12 }
 0x260   : > { %p1978_p9 = pnand %p1977_p11, %p2650_p2 }
 0x261   : > { %p1983_p8 = por %p1982_p6, %p1981_p4 }
 0x262   : > { %p1979_p1 = pneg %p1978_p9 }
 0x264   : > { %p1984_p5 = pnand %p1983_p8, %p1979_p1 }
 0x266   : > { %1987 = shalt.err (!%p1984_p5)
}
 0x267   : > { %s2038_s30 = smov 128   ;;  %s2039_s5 = smov 8  }
 0x268   : > { %1821 = dma.vmem_to_hbm [thread:$0]  (%p2650_p2), %s2570_s29, 1024, %s2568_s26, %s1278_s19, %s2038_s30, %s2038_s30, %s2039_s5  }
 0x269 PF: > { %s1306_s7 = sand.u32 1, %s2018_s15   ;;  %p2651_p7 = scmp.ne.s32.totalorder %s2625_s22, 0 }
 0x26a   : > { %p2652_p12 = scmp.ge.s32.totalorder %s2030_s18, 2  ;;  %s1307_s9 = scalar_lea.sflag [#allocation4], %s1306_s7 }
 0x26c   : > { %p1835_p13 = pnand %p2652_p12, %p2651_p7 }
 0x26e   : > { %p1836_p0 = pneg %p1835_p13 }
 0x270   : > { %2013 = dma.done.wait (%p1836_p0), %s1307_s9, 1024  }
 0x271   : > { %2015 = vsyncadd (%p1836_p0), %s1307_s9, 4294966272  ;;  %p18_p10 = scmp.ge.s32.totalorder %s2143_s11, 4   ;;  %s2653_s15 = smov %s2022_s16 }
 0x272   : > { %s2654_s16 = smov %s2026_s17  ;;  %s2655_s17 = smov %s2159_s20 }
 0x273   : > { %s2656_s18 = smov %s2143_s11  ;;  %20 = sbr.rel (!%p18_p10) target bundleno = 6 (0x6), region = 93 }
 0x278   :  { %1312 = vsyncpa [#allocation3], 1 }
 0x279   :  { %1314 = vsyncpa [#allocation3 + $0x1], 1 }
 0x27a   :  { %1315 = vsyncpa [#allocation6], 1 }
 0x27b   :  { %1316 = vsyncpa [#allocation4], 1 }
 0x27c   :  { %1318 = vsyncpa [#allocation4 + $0x1], 1 }

</bundles_post_ra>
